<compile_context>
chip_gen: v7x
topology: tpu7x:2x2x1
jax: 0.10.0
libtpu: 0.0.40
codegen_flags: <defaults>
</compile_context>

<pallas_src>
import functools

import jax
import jax.numpy as jnp
from jax.experimental import pallas as pl
from jax.experimental.pallas import tpu as pltpu

NEG_SLOPE = 0.01   # nn.LeakyReLU() default negative_slope
EPS = 1e-10        # used only by the pure-JAX reference (mirrors torch's clamp)


# ----------------------------------------------------------------------------- sizing
def _vmem_capacity_bytes(default=64 << 20):
    """Per-core VMEM capacity (64 MiB on v7x, 128 MiB on v5e/v6e); safe fallback."""
    try:
        cap = int(pltpu.get_tpu_info().vmem_capacity_bytes)
        if cap > 0:
            return cap
    except Exception:
        pass
    return default


def _choose_batch_tile(b, max_tb=256):
    """Largest multiple-of-8 divisor of b (<= max_tb); keep >=2 tiles when b >= 16
    so both v7x TensorCores get work on the 'parallel' batch axis."""
    cands = [t for t in range(8, min(b, max_tb) + 1, 8) if b % t == 0]
    if not cands:
        return b                       # full-batch block (legal: equals full dim)
    tb = max(cands)
    if b >= 16:
        multi = [t for t in cands if b // t >= 2]
        if multi:
            tb = max(multi)
    return tb


def _choose_col_tile(d_out, budget_bytes, footprint_fn, max_tile_cols=None):
    """Largest 128-aligned divisor of d_out whose footprint fits the VMEM budget."""
    cap = d_out if max_tile_cols is None else max(1, min(max_tile_cols, d_out))
    cands = [c for c in range(128, cap + 1, 128) if d_out % c == 0]
    if d_out <= cap:
        cands.append(d_out)            # full width (legal regardless of alignment)
    cands = sorted(set(cands))
    if not cands:
        cands = [d_out]                # only legal block shape
    fitting = [c for c in cands if footprint_fn(c) <= budget_bytes]
    return max(fitting) if fitting else min(cands)


def _choose_pix_tile(dim, n_vals, budget_bytes, footprint_fn, max_tile_cols=None):
    """Largest pixel tile (mult. of 8, lane-aligned tile_pix*n_vals) under budget."""
    cap_cols = dim * n_vals if max_tile_cols is None else max(1, min(max_tile_cols,
                                                                     dim * n_vals))
    cands = [p for p in range(8, dim + 1, 8)
             if dim % p == 0 and (p * n_vals) % 128 == 0 and p * n_vals <= cap_cols]
    if dim * n_vals <= cap_cols:
        cands.append(dim)              # full pixel width (always legal)
    cands = sorted(set(cands))
    if not cands:
        cands = [dim]
    fitting = [p for p in cands if footprint_fn(p) <= budget_bytes]
    return max(fitting) if fitting else min(cands)


# ----------------------------------------------------------------------------- kernels
def _early_mlp_kernel(n_early, z_ref, *refs):
    """Linear -> LeakyReLU for all layers except the last; writes bf16 h_mid."""
    *wb, h_out_ref = refs
    h = z_ref[...].astype(jnp.float32)
    for i in range(n_early):
        w = wb[2 * i][...]
        b = wb[2 * i + 1][...]
        h = jnp.dot(h.astype(w.dtype), w, preferred_element_type=jnp.float32) + b
        h = jnp.where(h > 0, h, NEG_SLOPE * h)
    h_out_ref[...] = h.astype(h_out_ref.dtype)


def _logprob_bernoulli_kernel(x_ref, hm_ref, w_ref, b_ref, out_ref):
    # Last Linear (bf16 operands, f32 MXU accumulation) + LeakyReLU (torch applies
    # the activation after the final Linear as well).
    h = jnp.dot(hm_ref[...], w_ref[...], preferred_element_type=jnp.float32)
    h = h + b_ref[...]
    h = jnp.where(h > 0, h, NEG_SLOPE * h)
    # Logits-form Bernoulli log-likelihood: x*h - softplus(h)  (stable softplus).
    # Equivalent to x*log(sigmoid(h)) + (1-x)*log(1-sigmoid(h)) for any real x.
    sp = jnp.maximum(h, 0.0) + jnp.log(1.0 + jnp.exp(-jnp.abs(h)))
    lp = x_ref[...].astype(jnp.float32) * h - sp
    out_ref[...] = jnp.sum(lp, axis=1, keepdims=True)[None]          # (1, tb, 1)


def _logprob_categorical_kernel(n_vals, tile_pix, x_ref, hm_ref, w_ref, b_ref, out_ref):
    h = jnp.dot(hm_ref[...], w_ref[...], preferred_element_type=jnp.float32)
    h = h + b_ref[...]
    h = jnp.where(h > 0, h, NEG_SLOPE * h)                            # LeakyReLU
    tb = h.shape[0]
    # NOTE: this (tb, P*V) -> (tb, P, V) reshape moves batch off the sublane axis and
    # may relayout in VMEM; acceptable here (EUP exp dominates), flagged for audit.
    h3 = h.reshape(tb, tile_pix, n_vals)
    x_idx = x_ref[...]                                                # (tb, P, 1) i32
    # log-softmax + compare-select gather:  lp = h[x] - logsumexp(h)
    # (out-of-range class indices silently contribute h_sel = 0; no bounds check)
    classes = jax.lax.broadcasted_iota(jnp.int32, h3.shape, 2)
    sel = classes == x_idx
    m = jnp.max(h3, axis=2, keepdims=True)
    lse = m + jnp.log(jnp.sum(jnp.exp(h3 - m), axis=2, keepdims=True))
    h_sel = jnp.sum(jnp.where(sel, h3, 0.0), axis=2, keepdims=True)
    out_ref[...] = jnp.sum(h_sel - lse, axis=1)[None]                 # (1, tb, 1)


# ----------------------------------------------------------------------------- module
class PallasPyTDecoder:
    """JAX/Pallas port of PyTDecoder (forward with process='log_prob')."""

    def __init__(self, decoder_dims, n_vals, distribution, key,
                 param_dtype=jnp.bfloat16, max_tile_cols=None):
        assert distribution in ("bernoulli", "categorical")
        self.decoder_dims = list(decoder_dims)
        self.n_vals = n_vals
        self.distribution = distribution
        self.n_layers = len(decoder_dims) - 1
        self.max_tile_cols = max_tile_cols
        self.ws, self.bs = [], []
        for i in range(self.n_layers):
            fan_in, fan_out = decoder_dims[i], decoder_dims[i + 1]
            key, kw, kb = jax.random.split(key, 3)
            bound = 1.0 / (fan_in ** 0.5)                 # torch Linear default init
            w = jax.random.uniform(kw, (fan_in, fan_out), jnp.float32, -bound, bound)
            b = jax.random.uniform(kb, (1, fan_out), jnp.float32, -bound, bound)
            self.ws.append(w.astype(param_dtype))         # bf16 weights (HBM-BW win)
            self.bs.append(b)                             # f32 biases

    # ------------------------------------------------------------------ log-prob
    def _log_prob_per_batch(self, x, z):
        """Returns (B, 1): per-batch log-prob summed over the feature dimensions."""
        b_sz, d_in = z.shape
        k_last = self.decoder_dims[-2]
        d_out = self.decoder_dims[-1]
        n_early = self.n_layers - 1

        tb = _choose_batch_tile(b_sz)
        assert b_sz % tb == 0
        b_tiles = b_sz // tb

        cap = _vmem_capacity_bytes()
        tile_budget = int(cap * 0.35)   # double-buffered working-set budget

        # ---------------- stage 1: early (tiny) layers -> bf16 h_mid of shape (B, K)
        if n_early == 0:
            h_mid = z.astype(jnp.bfloat16)
        else:
            wb_early = []
            for i in range(n_early):
                wb_early += [self.ws[i], self.bs[i]]
            h_mid = pl.pallas_call(
                functools.partial(_early_mlp_kernel, n_early),
                out_shape=jax.ShapeDtypeStruct((b_sz, k_last), jnp.bfloat16),
                grid=(b_tiles,),
                in_specs=[pl.BlockSpec((tb, d_in), lambda b: (b, 0))]
                + [pl.BlockSpec(a.shape, lambda b: (0, 0)) for a in wb_early],
                out_specs=pl.BlockSpec((tb, k_last), lambda b: (b, 0)),
                compiler_params=pltpu.CompilerParams(
                    dimension_semantics=("parallel",)),
            )(z.astype(jnp.float32), *wb_early)

        # ---------------- stage 2: last Linear + LeakyReLU + likelihood
        w_last, b_last = self.ws[-1], self.bs[-1]

        if self.distribution == "bernoulli":
            def footprint(c):           # bytes: double-buffered tiles + live temps
                dbl = 2 * (k_last * c * 2 + c * 4 + tb * c * 2 + tb * k_last * 2 + tb * 4)
                return dbl + 3 * tb * c * 4
            tile_n = _choose_col_tile(d_out, tile_budget, footprint, self.max_tile_cols)
            n_tiles = d_out // tile_n
            # x in {0,1}: bf16 is exact and halves the HBM stream.
            x2 = x.reshape(b_sz, d_out).astype(jnp.bfloat16)
            x_spec = pl.BlockSpec((tb, tile_n), lambda n, b: (b, n))
            kernel = _logprob_bernoulli_kernel
            est = footprint(tile_n)
        else:
            assert d_out % self.n_vals == 0
            dim = d_out // self.n_vals

            def footprint(p):
                c = p * self.n_vals
                dbl = 2 * (k_last * c * 2 + c * 4 + tb * p * 4 + tb * k_last * 2 + tb * 4)
                return dbl + 4 * tb * c * 4
            tile_pix = _choose_pix_tile(dim, self.n_vals, tile_budget, footprint,
                                        self.max_tile_cols)
            tile_n = tile_pix * self.n_vals
            n_tiles = dim // tile_pix
            # (B, dim, 1): pixel axis on sublanes so it can be block-tiled.
            x2 = x.reshape(b_sz, dim).astype(jnp.int32)[:, :, None]
            x_spec = pl.BlockSpec((tb, tile_pix, 1), lambda n, b: (b, n, 0))
            kernel = functools.partial(_logprob_categorical_kernel,
                                       self.n_vals, tile_pix)
            est = footprint(tile_pix)

        # Raise the scoped-VMEM limit only as far as the chosen tiles need,
        # capped well under the per-core capacity (v7x: 64 MiB/TC).
        vmem_limit = int(max(32 << 20, min(int(cap * 0.7), 2 * est + (16 << 20))))

        # Grid: column tiles outer, batch tiles INNER -> W_last's block index is
        # constant across consecutive steps, so each column tile is DMA'd once.
        # Each (n, b) output block is written exactly once (no cross-step accumulator).
        partial = pl.pallas_call(
            kernel,
            out_shape=jax.ShapeDtypeStruct((n_tiles, b_sz, 1), jnp.float32),
            grid=(n_tiles, b_tiles),
            in_specs=[x_spec,
                      pl.BlockSpec((tb, k_last), lambda n, b: (b, 0)),
                      pl.BlockSpec((k_last, tile_n), lambda n, b: (0, n)),
                      pl.BlockSpec((1, tile_n), lambda n, b: (0, n))],
            out_specs=pl.BlockSpec((1, tb, 1), lambda n, b: (n, b, 0)),
            compiler_params=pltpu.CompilerParams(
                dimension_semantics=("parallel", "parallel"),
                vmem_limit_bytes=vmem_limit),
        )(x2, h_mid, w_last, b_last)

        return jnp.sum(partial, axis=0)                              # (B, 1)

    # ------------------------------------------------------------------ forward
    def forward(self, x, z, process):
        assert process in ["sample", "log_prob"], "TypeError"
        if process == "log_prob":
            per_batch = self._log_prob_per_batch(x, z)               # (B, 1)
            if self.distribution == "bernoulli":
                # log_prob(reduction='sum', dim=-1) -> (B,); forward's .sum(-1) -> scalar
                return jnp.sum(per_batch)
            # categorical: log_prob -> (B, dim); forward's .sum(-1) -> (B,)
            return per_batch[:, 0]
        # TODO(synk): process='sample' uses torch.bernoulli / torch.multinomial; the
        # stochastic draw has no Pallas equivalent matching the torch RNG stream.
        raise NotImplementedError("process='sample' not implemented (stochastic RNG)")


# ----------------------------------------------------------------------------- reference
def _ref_forward(dec, x, z):
    """Pure-JAX reference of PyTDecoder.forward(x, z, 'log_prob') (torch clamp+log form),
    using the decoder's stored bf16 weights with the same f32-accumulation recipe."""
    h = z.astype(jnp.float32)
    for w, b in zip(dec.ws, dec.bs):
        h = jnp.dot(h.astype(w.dtype), w, preferred_element_type=jnp.float32) + b
        h = jnp.where(h > 0, h, NEG_SLOPE * h)
    if dec.distribution == "bernoulli":
        p = jax.nn.sigmoid(h)
        pp = jnp.clip(p, EPS, 1.0 - EPS)
        xf = x.reshape(x.shape[0], -1).astype(jnp.float32)
        lp = xf * jnp.log(pp) + (1.0 - xf) * jnp.log(1.0 - pp)
        return jnp.sum(lp)
    b_sz = h.shape[0]
    dim = h.shape[1] // dec.n_vals
    p = jax.nn.softmax(h.reshape(b_sz, dim, dec.n_vals), axis=2)
    pp = jnp.clip(p, EPS, 1.0 - EPS)
    xi = x.reshape(b_sz, -1).astype(jnp.int32)
    oh = jax.nn.one_hot(xi, dec.n_vals, dtype=jnp.float32)
    lp = oh * jnp.log(pp)
    return jnp.sum(jnp.sum(lp, axis=-1), axis=-1)


if __name__ == "__main__":
    key = jax.random.PRNGKey(0)
    k_pb, k_pb2, k_pc, k_z, k_z2, k_xb, k_xb2, k_xc = jax.random.split(key, 8)

    B = 8
    D_LAT = 8
    z = jax.random.normal(k_z, (B, D_LAT), jnp.float32)

    # --- 1) bernoulli, W_last fully resident (grid (1, 1)): decoder_dims=[8, 32, 256]
    dec_b = PallasPyTDecoder([D_LAT, 32, 256], n_vals=256, distribution="bernoulli",
                             key=k_pb)
    x_bern = (jax.random.uniform(k_xb, (B, 256)) > 0.5).astype(jnp.float32)
    out_b = dec_b.forward(x_bern, z, "log_prob")
    jax.block_until_ready(out_b)
    ref_b = _ref_forward(dec_b, x_bern, z)
    assert out_b.shape == ()
    assert jnp.allclose(out_b, ref_b, rtol=2e-3, atol=5e-2), (out_b, ref_b)

    # --- 2) bernoulli, forced column tiling + 2 batch tiles (grid (2, 2)):
    #        exercises W residency across the inner batch axis and partial-sum outputs.
    B2 = 32
    z2 = jax.random.normal(k_z2, (B2, D_LAT), jnp.float32)
    dec_b2 = PallasPyTDecoder([D_LAT, 32, 256], n_vals=256, distribution="bernoulli",
                              key=k_pb2, max_tile_cols=128)
    x_bern2 = (jax.random.uniform(k_xb2, (B2, 256)) > 0.5).astype(jnp.float32)
    out_b2 = dec_b2.forward(x_bern2, z2, "log_prob")
    jax.block_until_ready(out_b2)
    ref_b2 = _ref_forward(dec_b2, x_bern2, z2)
    assert out_b2.shape == ()
    assert jnp.allclose(out_b2, ref_b2, rtol=2e-3, atol=5e-2), (out_b2, ref_b2)

    # --- 3) categorical: x is (B, 4, 4) with 256 classes; 8-pixel tiles -> grid (2, 1).
    H = 4
    dec_c = PallasPyTDecoder([D_LAT, 32, H * H * 256], n_vals=256,
                             distribution="categorical", key=k_pc, max_tile_cols=2048)
    x_cat = jax.random.randint(k_xc, (B, H, H), 0, 256, jnp.int32)
    out_c = dec_c.forward(x_cat, z, "log_prob")
    jax.block_until_ready(out_c)
    ref_c = _ref_forward(dec_c, x_cat, z)
    assert out_c.shape == (B,)
    assert jnp.allclose(out_c, ref_c, rtol=2e-3, atol=5e-2), (out_c, ref_c)

    print("KERNEL_OK")
</pallas_src>

<mosaic_0001>
module attributes {stable_mosaic.version = 11 : i64} {
  func.func @_early_mlp_kernel(%arg0: i32, %arg1: memref<8x8xf32, #tpu.memory_space<vmem>>, %arg2: memref<8x32xbf16, #tpu.memory_space<vmem>>, %arg3: memref<1x32xf32, #tpu.memory_space<vmem>>, %arg4: memref<8x32xbf16, #tpu.memory_space<vmem>>) attributes {dimension_semantics = [#tpu.dimension_semantics<parallel>], iteration_bounds = array<i64: 1>, scalar_prefetch = 0 : i64, scratch_operands = 0 : i64, tpu.core_type = #tpu.core_type<tc>, window_params = [{transform_indices = @transform_0, window_bounds = array<i64: 8, 8>}, {pipeline_mode = #tpu.pipeline_mode<synchronous>, transform_indices = @transform_1, window_bounds = array<i64: 8, 32>}, {pipeline_mode = #tpu.pipeline_mode<synchronous>, transform_indices = @transform_2, window_bounds = array<i64: 1, 32>}, {transform_indices = @transform_3, window_bounds = array<i64: 8, 32>}]} {
    %c0 = arith.constant 0 : index
    %c0_0 = arith.constant 0 : index
    %0 = vector.load %arg1[%c0, %c0_0] : memref<8x8xf32, #tpu.memory_space<vmem>>, vector<8x8xf32>
    %c0_1 = arith.constant 0 : index
    %c0_2 = arith.constant 0 : index
    %1 = vector.load %arg2[%c0_1, %c0_2] : memref<8x32xbf16, #tpu.memory_space<vmem>>, vector<8x32xbf16>
    %c0_3 = arith.constant 0 : index
    %c0_4 = arith.constant 0 : index
    %2 = vector.load %arg3[%c0_3, %c0_4] : memref<1x32xf32, #tpu.memory_space<vmem>>, vector<1x32xf32>
    %3 = arith.truncf %0 : vector<8x8xf32> to vector<8x8xbf16>
    %cst = arith.constant dense<0.000000e+00> : vector<8x32xf32>
    %4 = tpu.matmul %3, %1, %cst {dimension_numbers = #tpu.dot_dimension_numbers<[1], [0], [0], [1], [0, 0, 1, 1], [], []>} : vector<8x8xbf16>, vector<8x32xbf16>, vector<8x32xf32> -> vector<8x32xf32>
    %5 = vector.broadcast %2 : vector<1x32xf32> to vector<8x32xf32>
    %6 = arith.addf %4, %5 : vector<8x32xf32>
    %cst_5 = arith.constant 0.000000e+00 : f32
    %7 = vector.broadcast %cst_5 : f32 to vector<8x32xf32>
    %8 = arith.cmpf ogt, %6, %7 : vector<8x32xf32>
    %cst_6 = arith.constant 0.00999999977 : f32
    %9 = vector.broadcast %cst_6 : f32 to vector<8x32xf32>
    %10 = arith.mulf %9, %6 : vector<8x32xf32>
    %11 = arith.select %8, %6, %10 : vector<8x32xi1>, vector<8x32xf32>
    %12 = arith.truncf %11 : vector<8x32xf32> to vector<8x32xbf16>
    %c0_7 = arith.constant 0 : index
    %c0_8 = arith.constant 0 : index
    %13 = vector.load %arg4[%c0_7, %c0_8] : memref<8x32xbf16, #tpu.memory_space<vmem>>, vector<8x32xbf16>
    tpu.vector_store %arg4[%c0_7, %c0_8], %12 {strides = array<i32>} : memref<8x32xbf16, #tpu.memory_space<vmem>>, vector<8x32xbf16>,
    return
  }
  func.func @transform_0(%arg0: i32) -> (i32, i32) {
    %c0_i32 = arith.constant 0 : i32
    %c0_i32_0 = arith.constant 0 : i32
    return %arg0, %c0_i32 : i32, i32
  }
  func.func @transform_1(%arg0: i32) -> (i32, i32) {
    %c0_i32 = arith.constant 0 : i32
    %c0_i32_0 = arith.constant 0 : i32
    %c0_i32_1 = arith.constant 0 : i32
    return %c0_i32, %c0_i32_0 : i32, i32
  }
  func.func @transform_2(%arg0: i32) -> (i32, i32) {
    %c0_i32 = arith.constant 0 : i32
    %c0_i32_0 = arith.constant 0 : i32
    %c0_i32_1 = arith.constant 0 : i32
    return %c0_i32, %c0_i32_0 : i32, i32
  }
  func.func @transform_3(%arg0: i32) -> (i32, i32) {
    %c0_i32 = arith.constant 0 : i32
    %c0_i32_0 = arith.constant 0 : i32
    return %arg0, %c0_i32 : i32, i32
  }
}

</mosaic_0001>

<bundles_post_ra>
// kernel: tpu_custom_call.1
= control target key start
LH: loop header
LB: loop body
LE: loop exit
PB: predicated region body
PF: predicated region fallthrough
CT: control target
= control target key end

     0   :  { %8 = vsyncpa [#allocation3], 0  ;;  %s271_s0 = inlined_call_operand.hbm [shape: f32[8,8], index: 0, kind: input, shape index: {}]   ;;  %s272_s1 = inlined_call_operand.hbm [shape: bf16[8,32], index: 1, kind: input, shape index: {}]   ;;  %s273_s2 = inlined_call_operand.vmem [shape: f32[1,32], index: 2, kind: input, shape index: {}]   ;;  %s274_s3 = inlined_call_operand.hbm [shape: bf16[8,32], index: 3, kind: output, shape index: {}]  }
   0x1   :  { %9 = vsyncpa [#allocation6], 0 }
   0x2   :  { %10 = vsyncpa [#allocation4], 0  ;;  %s207_s12 = smov [#allocation2]   ;;  %s208_s14 = smov [#allocation5]  }
   0x3   :  { %s17_s13 = sshll.u32 %s207_s12, 4  ;;  %s27_s15 = sshll.u32 %s208_s14, 4  ;;  %s18_s13 = int_to_ptr.vmem [resolvable:$true] %s17_s13  ;;  %s28_s15 = int_to_ptr.vmem [resolvable:$true] %s27_s15 }
   0x4   :  { %s135_s18 = scalar_lea.hbm %s271_s0, 128 }
   0x5   :  { %p136_p0 = scmp.ne.s32.totalorder %s271_s0, %s135_s18  ;;  %p139_p1 = scmp.lt.u32.totalorder %s135_s18, %s271_s0 }
   0x7   :  { %p141_p2 = pnand %p139_p1, %p136_p0 }
   0x9   :  { %144 = shalt.err (!%p141_p2)
}
   0xa   :  { %s145_s23 = scalar_lea.vmem %s18_s13, 128  ;;  %p150_p4 = scmp.lt.s32.totalorder %s18_s13, %s18_s13 }
   0xb   :  { %p146_p3 = scmp.ne.s32.totalorder %s18_s13, %s145_s23  ;;  %p151_p5 = scmp.lt.s32.totalorder %s145_s23, %s145_s23 }
   0xd   :  { %p152_p6 = por %p151_p5, %p150_p4 }
   0xf   :  { %p153_p7 = pnand %p152_p6, %p146_p3 }
  0x11   :  { %156 = shalt.err (!%p153_p7)
}
  0x12   :  { %20 = dma.hbm_to_vmem [thread:$0]  %s271_s0, 128, %s18_s13, [#allocation3]  }
  0x13   :  { %s157_s28 = scalar_lea.hbm %s272_s1, 64 }
  0x14   :  { %p158_p8 = scmp.ne.s32.totalorder %s272_s1, %s157_s28  ;;  %p161_p9 = scmp.lt.u32.totalorder %s157_s28, %s272_s1 }
  0x16   :  { %p163_p10 = pnand %p161_p9, %p158_p8 }
  0x18   :  { %166 = shalt.err (!%p163_p10)
}
  0x19   :  { %s167_s6 = scalar_lea.vmem %s28_s15, 64  ;;  %p172_p12 = scmp.lt.s32.totalorder %s28_s15, %s28_s15 }
  0x1a   :  { %p168_p11 = scmp.ne.s32.totalorder %s28_s15, %s167_s6  ;;  %p173_p13 = scmp.lt.s32.totalorder %s167_s6, %s167_s6 }
  0x1c   :  { %p174_p0 = por %p173_p13, %p172_p12 }
  0x1e   :  { %p175_p1 = pnand %p174_p0, %p168_p11 }
  0x20   :  { %178 = shalt.err (!%p175_p1)
}
  0x21   :  { %30 = dma.hbm_to_vmem [thread:$0]  %s272_s1, 64, %s28_s15, [#allocation6]  }
  0x22   :  { %201 = dma.done.wait [#allocation3], 128  }
  0x23   :  { %202 = vsyncadd [#allocation3], 4294967168 }
  0x24   :  { %203 = dma.done.wait [#allocation6], 64  }
  0x25   :  { %204 = vsyncadd [#allocation6], 4294967232  ;;  %v209_v0 = vmov 0.0   ;;  %vm210_vm0 = vmmov 0   ;;  %vm54_vm1 = vcmask 1043456   ;;  %v40_v2 = vld [vmem:[#allocation2] sm:$0xff] }
  0x26   :  { %124 = vmatprep.subr.bf16.mxu0 %v209_v0  ;;  %126 = vmatprep.mubr.msk.bf16.mxu0 %vm210_vm0, %v209_v0  ;;  %v41_v1 = vld [vmem:[#allocation5] sm:$0xf]  ;;  %v43_v4 = vpack.c.bf16 %v40_v2, %v40_v2  ;;  %vm50_vm2 = vcmask 64512   ;;  %v120_v5 = vld [vmem:[%s273_s2] ss:$0 sm:$0xff]  ;;  %s211_s1 = smov [#allocation7]  }
  0x27   :  { %v56_v3 = vsel %vm54_vm1, %v41_v1, 0  ;;  %s110_s10 = sshll.u32 %s211_s1, 4  ;;  %vm102_vm4 = vcmask 257024   ;;  %s111_s10 = int_to_ptr.vmem [resolvable:$true] %s110_s10 }
  0x28   :  { %125 = vmatpush3.bf16.msra.mxu0 %v56_v3  ;;  %s179_s11 = scalar_lea.vmem %s111_s10, 64  ;;  %p184_p3 = scmp.lt.s32.totalorder %s111_s10, %s111_s10 }
  0x29   :  { %p180_p2 = scmp.ne.s32.totalorder %s111_s10, %s179_s11  ;;  %p185_p4 = scmp.lt.s32.totalorder %s179_s11, %s179_s11 }
  0x2b   :  { %127 = vmatmul.mubr.msk.bf16.vlgmr.msra.gmra.mrb[0].mxu0 %vm50_vm2, %v43_v4  ;;  %p186_p5 = por %p185_p4, %p184_p3 }
  0x2d   :  { %p187_p6 = pnand %p186_p5, %p180_p2 }
  0xfe   :  { %v92_v6 = vpop.f32.mrb[0].mxu0 }
  0xff   :  { %v93_v7 = vadd.f32 %v120_v5, %v92_v6  ;;  %v128_v8 = vpop.f32.mrb[1].mxu0 }
 0x100   :  { %v95_v9 = vpop.f32.mrb[2].mxu0 }
 0x101   :  { %vm98_vm3 = vcmp.gt.f32.partialorder %v93_v7, 0.0  ;;  %v99_v10 = vmul.f32 0.01, %v93_v7  ;;  %v129_v11 = vpop.f32.mrb[3].mxu0 }
 0x103   :  { %v100_v12 = vsel %vm98_vm3, %v93_v7, %v99_v10 }
 0x104   :  { %v101_v13 = vpack.c.bf16 %v100_v12, %v100_v12 }
 0x106   :  { %103 = vst.msk [vmem:[#allocation7] sm:$0xf] %vm102_vm4, %v101_v13 }
 0x107   :  { %190 = shalt.err (!%p187_p6)
}
 0x108   :  { %s191_s13 = scalar_lea.hbm %s274_s3, 64 }
 0x109   :  { %p192_p7 = scmp.ne.s32.totalorder %s274_s3, %s191_s13  ;;  %p195_p8 = scmp.lt.u32.totalorder %s191_s13, %s274_s3 }
 0x10b   :  { %p197_p9 = pnand %p195_p8, %p192_p7 }
 0x10d   :  { %200 = shalt.err (!%p197_p9)
}
 0x10e   :  { %113 = dma.vmem_to_hbm [thread:$0]  %s111_s10, 64, %s274_s3, [#allocation4]  }
 0x10f   :  { %205 = dma.done.wait [#allocation4], 64  }
 0x110   :  { %206 = vsyncadd [#allocation4], 4294967232 }
 0x111   :  { %117 = vsyncpa [#allocation3], 1 }
 0x112   :  { %118 = vsyncpa [#allocation6], 1 }
 0x113   :  { %119 = vsyncpa [#allocation4], 1 }

</bundles_post_ra>
